<compile_context>
chip_gen: v7x
topology: tpu7x:2x2x1
jax: 0.10.0
libtpu: 0.0.40
codegen_flags: <defaults>
</compile_context>

<pallas_src>
import math
import functools

import jax
import jax.numpy as jnp
from jax.experimental import pallas as pl
from jax.experimental.pallas import tpu as pltpu


def _mix32(x):
    """splitmix32-style finalizer; decorrelates consecutive uint32 counters."""
    x = x ^ (x >> 16)
    x = x * jnp.uint32(0x7FEB352D)
    x = x ^ (x >> 15)
    x = x * jnp.uint32(0x846CA68B)
    x = x ^ (x >> 16)
    return x


def _pe_dropout_kernel(seed_ref, x_ref, pe_ref, o_ref, *, dropout_p, training, bd_total):
    """out = dropout(x + pe) on one lane-dense 2-D (rows, features) tile."""
    y = x_ref[...] + pe_ref[...]                     # elementwise add in the input dtype

    if training and dropout_p > 0.0:
        tr, tc = x_ref.shape
        row0 = pl.program_id(0) * tr
        col0 = pl.program_id(1) * tc
        rows = jax.lax.broadcasted_iota(jnp.int32, (tr, tc), 0) + row0
        cols = jax.lax.broadcasted_iota(jnp.int32, (tr, tc), 1) + col0
        # Unique per-element counter -> distinct dropout mask in every tile.
        idx = (rows * bd_total + cols).astype(jnp.uint32)
        key = _mix32(seed_ref[0].astype(jnp.uint32) ^ jnp.uint32(0x9E3779B9))
        bits = _mix32(idx ^ key)
        bits = _mix32(bits + jnp.uint32(0x85EBCA6B))
        # Integer-domain keep test on the top 24 bits: keep iff u24 >= p * 2^24.
        thr = jnp.int32(min((1 << 24) - 1, int(round(float(dropout_p) * (1 << 24)))))
        keep = (bits >> 8).astype(jnp.int32) >= thr
        scale = 1.0 / (1.0 - float(dropout_p))
        y = jnp.where(keep, y, 0.0) * scale          # inverted dropout: one select + one mul

    o_ref[...] = y.astype(o_ref.dtype)


def make_positional_encoding(d_model: int, max_len: int = 5000) -> jnp.ndarray:
    """Deterministic buffer identical to the PyTorch __init__ (shape [max_len, 1, d_model])."""
    position = jnp.arange(max_len, dtype=jnp.float32)[:, None]            # (max_len, 1)
    div_term = jnp.exp(
        jnp.arange(0, d_model, 2, dtype=jnp.float32) * (-math.log(10000.0) / d_model)
    )
    pe = jnp.zeros((max_len, d_model), dtype=jnp.float32)
    pe = pe.at[:, 0::2].set(jnp.sin(position * div_term))
    if d_model % 2 != 0:
        pe = pe.at[:, 1::2].set(jnp.cos(position * div_term)[:, :-1])
    else:
        pe = pe.at[:, 1::2].set(jnp.cos(position * div_term))
    return pe[:, None, :]                                                  # (max_len, 1, d_model)


def _choose_tiles(seq_len, feat, itemsize, target_bytes=4 << 20):
    """Pick (row_tile, col_tile) so one VMEM buffer is ~target_bytes.

    3 streams (x, pe, out) x 2 double-buffers at 4 MiB each = 24 MiB, which fits
    the scoped-VMEM budget of v5e/v6e/v7x (limit raised explicitly below)."""
    if feat % 128 == 0 and feat * itemsize * 8 > target_bytes:
        tc = (target_bytes // (8 * itemsize)) // 128 * 128
        tc = max(128, min(tc, feat))
    else:
        tc = feat                                     # full (lane-dense) width
    if seq_len < 8:
        tr = seq_len                                  # must equal full dim if < 8
    else:
        tr = target_bytes // (tc * itemsize)
        tr = max(8, (min(tr, seq_len) // 8) * 8)      # multiple of 8 sublanes
    return tr, tc


def positional_encoding_forward(x, pe, seed, *, dropout_p=0.1, training=True):
    """x: (S, B, D).  pe: (max_len, 1, D).  seed: int scalar (ignored in eval mode)."""
    S, B, D = x.shape
    BD = B * D

    # Lane-dense 2-D views: (S, B, D) -> (S, B*D) is a free row-major reshape.
    # pe is broadcast over batch wrapper-side so kernel tiles are uniform and
    # stores are unmasked (trade-off: pe read traffic = x read traffic).
    x2 = x.reshape(S, BD)
    pe2 = jnp.broadcast_to(pe[:S], (S, B, D)).reshape(S, BD).astype(x.dtype)
    seed_arr = jnp.asarray([seed], dtype=jnp.int32)

    itemsize = jnp.dtype(x.dtype).itemsize
    tr, tc = _choose_tiles(S, BD, itemsize)
    grid = (pl.cdiv(S, tr), pl.cdiv(BD, tc))

    kernel = functools.partial(
        _pe_dropout_kernel,
        dropout_p=float(dropout_p),
        training=bool(training),
        bd_total=BD,
    )

    out2 = pl.pallas_call(
        kernel,
        out_shape=jax.ShapeDtypeStruct((S, BD), x.dtype),
        grid_spec=pltpu.PrefetchScalarGridSpec(
            num_scalar_prefetch=1,                    # seed lives in SMEM
            grid=grid,
            in_specs=[
                pl.BlockSpec((tr, tc), lambda i, j, seed: (i, j)),
                pl.BlockSpec((tr, tc), lambda i, j, seed: (i, j)),
            ],
            out_specs=pl.BlockSpec((tr, tc), lambda i, j, seed: (i, j)),
        ),
        compiler_params=pltpu.CompilerParams(
            dimension_semantics=("parallel", "parallel"),  # independent tiles; v7x 2-TC sharding
            vmem_limit_bytes=40 * 1024 * 1024,
        ),
    )(seed_arr, x2, pe2)

    return out2.reshape(S, B, D)


if __name__ == "__main__":
    SEQ, BATCH, D_MODEL = 8, 2, 32
    MAX_LEN = 5000
    DROPOUT_P = 0.1

    key = jax.random.PRNGKey(0)
    x = jax.random.normal(key, (SEQ, BATCH, D_MODEL), dtype=jnp.float32)
    pe = make_positional_encoding(D_MODEL, MAX_LEN)
    ref = x + pe[:SEQ]

    # 1) eval-mode check (dropout = identity): must equal x + pe
    out_eval = positional_encoding_forward(x, pe, seed=0, dropout_p=DROPOUT_P, training=False)
    out_eval = jax.block_until_ready(out_eval)
    assert jnp.allclose(out_eval, ref, atol=1e-6), "eval-mode mismatch vs reference"

    # 2) training-mode run (in-kernel inverted dropout)
    out_train = positional_encoding_forward(x, pe, seed=1234, dropout_p=DROPOUT_P, training=True)
    out_train = jax.block_until_ready(out_train)

    # surviving elements must equal (x + pe) / (1 - p); dropped ones are exactly 0
    nonzero = out_train != 0.0
    scaled_ref = ref / (1.0 - DROPOUT_P)
    assert jnp.allclose(jnp.where(nonzero, out_train, scaled_ref), scaled_ref, atol=1e-5)

    # dropout mask sanity: some (but not all) elements dropped
    dropped = int(jnp.sum(~nonzero))
    assert 0 < dropped < out_train.size, f"degenerate dropout mask: {dropped} dropped"

    print("KERNEL_OK")
</pallas_src>

<mosaic_0001>
module attributes {stable_mosaic.version = 11 : i64} {
  func.func @_pe_dropout_kernel(%arg0: i32, %arg1: i32, %arg2: memref<1xi32, #tpu.memory_space<smem>>, %arg3: memref<8x64xf32, #tpu.memory_space<vmem>>, %arg4: memref<8x64xf32, #tpu.memory_space<vmem>>, %arg5: memref<8x64xf32, #tpu.memory_space<vmem>>) attributes {dimension_semantics = [#tpu.dimension_semantics<parallel>, #tpu.dimension_semantics<parallel>], iteration_bounds = array<i64: 1, 1>, scalar_prefetch = 1 : i64, scratch_operands = 0 : i64, tpu.core_type = #tpu.core_type<tc>, window_params = [{transform_indices = @transform_0, window_bounds = array<i64: 8, 64>}, {transform_indices = @transform_1, window_bounds = array<i64: 8, 64>}, {transform_indices = @transform_2, window_bounds = array<i64: 8, 64>}]} {
    %c0 = arith.constant 0 : index
    %c0_0 = arith.constant 0 : index
    %0 = vector.load %arg3[%c0, %c0_0] : memref<8x64xf32, #tpu.memory_space<vmem>>, vector<8x64xf32>
    %c0_1 = arith.constant 0 : index
    %c0_2 = arith.constant 0 : index
    %1 = vector.load %arg4[%c0_1, %c0_2] : memref<8x64xf32, #tpu.memory_space<vmem>>, vector<8x64xf32>
    %2 = arith.addf %0, %1 : vector<8x64xf32>
    %c0_3 = arith.constant 0 : index
    %c0_4 = arith.constant 0 : index
    %3 = vector.load %arg5[%c0_3, %c0_4] : memref<8x64xf32, #tpu.memory_space<vmem>>, vector<8x64xf32>
    tpu.vector_store %arg5[%c0_3, %c0_4], %2 {strides = array<i32>} : memref<8x64xf32, #tpu.memory_space<vmem>>, vector<8x64xf32>,
    return
  }
  func.func @transform_0(%arg0: i32, %arg1: i32, %arg2: memref<1xi32, #tpu.memory_space<smem>>) -> (i32, i32) {
    %c0_i32 = arith.constant 0 : i32
    return %arg0, %arg1 : i32, i32
  }
  func.func @transform_1(%arg0: i32, %arg1: i32, %arg2: memref<1xi32, #tpu.memory_space<smem>>) -> (i32, i32) {
    %c0_i32 = arith.constant 0 : i32
    return %arg0, %arg1 : i32, i32
  }
  func.func @transform_2(%arg0: i32, %arg1: i32, %arg2: memref<1xi32, #tpu.memory_space<smem>>) -> (i32, i32) {
    %c0_i32 = arith.constant 0 : i32
    return %arg0, %arg1 : i32, i32
  }
}

</mosaic_0001>

<bundles_post_ra>
// kernel: tpu_custom_call.1
= control target key start
LH: loop header
LB: loop body
LE: loop exit
PB: predicated region body
PF: predicated region fallthrough
CT: control target
= control target key end

     0   :  { %9 = vsyncpa [#allocation5], 0  ;;  %s193_s0 = inlined_call_operand.<no memory space> [shape: s32[1], index: 0, kind: input, shape index: {}]   ;;  %s194_s1 = inlined_call_operand.hbm [shape: f32[8,64], index: 1, kind: input, shape index: {}]   ;;  %s195_s2 = inlined_call_operand.hbm [shape: f32[8,64], index: 2, kind: input, shape index: {}]   ;;  %s196_s3 = inlined_call_operand.hbm [shape: f32[8,64], index: 3, kind: output, shape index: {}]  }
   0x1   :  { %10 = vsyncpa [#allocation8], 0 }
   0x2   :  { %11 = vsyncpa [#allocation6], 0  ;;  %s134_s12 = smov [#allocation4]   ;;  %s135_s14 = smov [#allocation7]  }
   0x3   :  { %s18_s13 = sshll.u32 %s134_s12, 4  ;;  %s28_s15 = sshll.u32 %s135_s14, 4  ;;  %s19_s13 = int_to_ptr.vmem [resolvable:$true] %s18_s13  ;;  %s29_s15 = int_to_ptr.vmem [resolvable:$true] %s28_s15 }
   0x4   :  { %s62_s17 = scalar_lea.hbm %s194_s1, 128 }
   0x5   :  { %p63_p0 = scmp.ne.s32.totalorder %s194_s1, %s62_s17  ;;  %p66_p1 = scmp.lt.u32.totalorder %s62_s17, %s194_s1 }
   0x7   :  { %p68_p2 = pnand %p66_p1, %p63_p0 }
   0x9   :  { %71 = shalt.err (!%p68_p2)
}
   0xa   :  { %s72_s22 = scalar_lea.vmem %s19_s13, 128  ;;  %p77_p4 = scmp.lt.s32.totalorder %s19_s13, %s19_s13 }
   0xb   :  { %p73_p3 = scmp.ne.s32.totalorder %s19_s13, %s72_s22  ;;  %p78_p5 = scmp.lt.s32.totalorder %s72_s22, %s72_s22 }
   0xd   :  { %p79_p6 = por %p78_p5, %p77_p4 }
   0xf   :  { %p80_p7 = pnand %p79_p6, %p73_p3 }
  0x11   :  { %83 = shalt.err (!%p80_p7)
}
  0x12   :  { %21 = dma.hbm_to_vmem [thread:$0]  %s194_s1, 128, %s19_s13, [#allocation5]  }
  0x13   :  { %s84_s27 = scalar_lea.hbm %s195_s2, 128 }
  0x14   :  { %p85_p8 = scmp.ne.s32.totalorder %s195_s2, %s84_s27  ;;  %p88_p9 = scmp.lt.u32.totalorder %s84_s27, %s195_s2 }
  0x16   :  { %p90_p10 = pnand %p88_p9, %p85_p8 }
  0x18   :  { %93 = shalt.err (!%p90_p10)
}
  0x19   :  { %s94_s5 = scalar_lea.vmem %s29_s15, 128  ;;  %p99_p12 = scmp.lt.s32.totalorder %s29_s15, %s29_s15 }
  0x1a   :  { %p95_p11 = scmp.ne.s32.totalorder %s29_s15, %s94_s5  ;;  %p100_p13 = scmp.lt.s32.totalorder %s94_s5, %s94_s5 }
  0x1c   :  { %p101_p0 = por %p100_p13, %p99_p12 }
  0x1e   :  { %p102_p1 = pnand %p101_p0, %p95_p11 }
  0x20   :  { %105 = shalt.err (!%p102_p1)
}
  0x21   :  { %31 = dma.hbm_to_vmem [thread:$0]  %s195_s2, 128, %s29_s15, [#allocation8]  }
  0x22   :  { %128 = dma.done.wait [#allocation5], 128  }
  0x23   :  { %129 = vsyncadd [#allocation5], 4294967168 }
  0x24   :  { %130 = dma.done.wait [#allocation8], 128  }
  0x25   :  { %131 = vsyncadd [#allocation8], 4294967168  ;;  %s136_s7 = smov [#allocation9]   ;;  %v38_v0 = vld [vmem:[#allocation4] sm:$0xff]  ;;  %v39_v1 = vld [vmem:[#allocation7] sm:$0xff]  ;;  %vm41_vm0 = vcmask 523264  }
  0x26   :  { %s49_s8 = sshll.u32 %s136_s7, 4  ;;  %v40_v2 = vadd.f32 %v39_v1, %v38_v0  ;;  %s50_s8 = int_to_ptr.vmem [resolvable:$true] %s49_s8 }
  0x27   :  { %s106_s9 = scalar_lea.vmem %s50_s8, 128  ;;  %p111_p3 = scmp.lt.s32.totalorder %s50_s8, %s50_s8 }
  0x28   :  { %42 = vst.msk [vmem:[#allocation9] sm:$0xff] %vm41_vm0, %v40_v2  ;;  %p107_p2 = scmp.ne.s32.totalorder %s50_s8, %s106_s9  ;;  %p112_p4 = scmp.lt.s32.totalorder %s106_s9, %s106_s9 }
  0x2a   :  { %p113_p5 = por %p112_p4, %p111_p3 }
  0x2c   :  { %p114_p6 = pnand %p113_p5, %p107_p2 }
  0x2e   :  { %117 = shalt.err (!%p114_p6)
}
  0x2f   :  { %s118_s11 = scalar_lea.hbm %s196_s3, 128 }
  0x30   :  { %p119_p7 = scmp.ne.s32.totalorder %s196_s3, %s118_s11  ;;  %p122_p8 = scmp.lt.u32.totalorder %s118_s11, %s196_s3 }
  0x32   :  { %p124_p9 = pnand %p122_p8, %p119_p7 }
  0x34   :  { %127 = shalt.err (!%p124_p9)
}
  0x35   :  { %52 = dma.vmem_to_hbm [thread:$0]  %s50_s8, 128, %s196_s3, [#allocation6]  }
  0x36   :  { %132 = dma.done.wait [#allocation6], 128  }
  0x37   :  { %133 = vsyncadd [#allocation6], 4294967168 }
  0x38   :  { %56 = vsyncpa [#allocation5], 1 }
  0x39   :  { %57 = vsyncpa [#allocation8], 1 }
  0x3a   :  { %58 = vsyncpa [#allocation6], 1 }

</bundles_post_ra>
